<compile_context>
chip_gen: v7x
topology: tpu7x:2x2x1
jax: 0.10.0
libtpu: 0.0.40
codegen_flags: <defaults>
</compile_context>

<pallas_src>
import functools
import math

import jax
import jax.numpy as jnp
from jax.experimental import pallas as pl
from jax.experimental.pallas import tpu as pltpu


def _round_up(x, m):
    return ((x + m - 1) // m) * m


# ----------------------------- Pallas kernel ------------------------------ #

def _complex_conv_mm_kernel(p_ref, w_ref, b_ref, o_ref):
    """One M-tile of the fused complex im2col matmul.

    p_ref : (tm, 2K)     [p_re | p_im] patch tile
    w_ref : (2K, 2Cop)   block weight [[w_re, w_im], [-w_im, w_re]] (Cop padded)
    b_ref : (1, 2Cop)    [b_re - b_im | b_re + b_im]
    o_ref : (tm, 2Cop)   [real | imag]
    """
    acc = jnp.dot(p_ref[...], w_ref[...], preferred_element_type=jnp.float32)
    o_ref[...] = (acc + b_ref[...].astype(jnp.float32)).astype(o_ref.dtype)


def _complex_mm(p, w_blk, b_row, out_dtype, *, tm=256):
    """Tiles the M (= N*OH*OW) axis; K and the padded 2*C_out stay whole."""
    M, K2 = p.shape
    Cop2 = w_blk.shape[1]

    # Tile size: multiple of 8 sublanes, no bigger than (padded) M.
    tm = max(8, min(tm, _round_up(M, 8)))
    M_pad = _round_up(M, tm)
    if M_pad != M:
        p = jnp.pad(p, ((0, M_pad - M), (0, 0)))

    # VMEM budget: double-buffered patch tile + weights + bias + output tile.
    in_b = jnp.dtype(p.dtype).itemsize
    out_b = jnp.dtype(out_dtype).itemsize
    needed = (2 * tm * K2 * in_b            # patch tiles (double buffered)
              + 2 * K2 * Cop2 * in_b        # block weights
              + 2 * Cop2 * 4                # bias row
              + 2 * tm * Cop2 * out_b)      # output tiles
    vmem_limit = int(min(max(2 * needed, 32 * 2**20), 48 * 2**20))

    grid = (M_pad // tm,)
    out = pl.pallas_call(
        _complex_conv_mm_kernel,
        out_shape=jax.ShapeDtypeStruct((M_pad, Cop2), out_dtype),
        grid_spec=pltpu.PrefetchScalarGridSpec(
            num_scalar_prefetch=0,
            grid=grid,
            in_specs=[
                pl.BlockSpec((tm, K2), lambda i: (i, 0)),     # patches
                pl.BlockSpec((K2, Cop2), lambda i: (0, 0)),   # block weights
                pl.BlockSpec((1, Cop2), lambda i: (0, 0)),    # bias row
            ],
            out_specs=pl.BlockSpec((tm, Cop2), lambda i: (i, 0)),
        ),
        compiler_params=pltpu.CompilerParams(
            dimension_semantics=("parallel",),
            vmem_limit_bytes=vmem_limit),
    )(p, w_blk, b_row)

    return out[:M]


# ------------------------------ JAX glue ----------------------------------- #

def _im2col(x2d, KH, KW, stride, padding, dilation):
    """x2d: (N, C, H, W) -> patches (N*OH*OW, C*KH*KW), PyTorch weight order."""
    N, C, H, W = x2d.shape
    xp = jnp.pad(x2d, ((0, 0), (0, 0), (padding, padding), (padding, padding)))
    Hp, Wp = H + 2 * padding, W + 2 * padding
    OH = (Hp - dilation * (KH - 1) - 1) // stride + 1
    OW = (Wp - dilation * (KW - 1) - 1) // stride + 1

    cols = []
    for kh in range(KH):
        for kw in range(KW):
            h0 = kh * dilation
            w0 = kw * dilation
            sl = xp[:, :,
                    h0:h0 + (OH - 1) * stride + 1:stride,
                    w0:w0 + (OW - 1) * stride + 1:stride]   # (N, C, OH, OW)
            cols.append(sl)
    # K ordering must match flattened PyTorch weight (C, KH, KW): C outermost.
    patches = jnp.stack(cols, axis=2)                       # (N, C, KH*KW, OH, OW)
    patches = patches.reshape(N, C * KH * KW, OH, OW)
    patches = patches.transpose(0, 2, 3, 1).reshape(N * OH * OW, C * KH * KW)
    return patches, OH, OW


@functools.partial(jax.jit, static_argnames=("stride", "padding", "dilation",
                                             "compute_dtype", "tm"))
def complex_conv2d(x, w_re, w_im, b_re, b_im, *, stride=1, padding=0,
                   dilation=1, compute_dtype=None, tm=256):
    """x: (N, Cin, H, W, 2); w_*: (Cout, Cin, KH, KW); b_*: (Cout,)."""
    N, Cin, H, W, _ = x.shape
    Co, _, KH, KW = w_re.shape
    K = Cin * KH * KW
    out_dtype = x.dtype

    # Complex axis -> channel axis: (N, 2*Cin, H, W) = [real chans | imag chans].
    # A single im2col then yields P = [p_re | p_im] with the right K ordering.
    x_cc = jnp.concatenate([x[..., 0], x[..., 1]], axis=1)
    p, OH, OW = _im2col(x_cc, KH, KW, stride, padding, dilation)   # (M, 2K)

    # Lane-dense output: pad C_out so 2*Cop is a multiple of 128.
    Cop = max(64, _round_up(Co, 64))
    pad_c = Cop - Co

    wre = w_re.reshape(Co, K).T                                    # (K, Co)
    wim = w_im.reshape(Co, K).T
    if pad_c:
        wre = jnp.pad(wre, ((0, 0), (0, pad_c)))
        wim = jnp.pad(wim, ((0, 0), (0, pad_c)))
    # Block weight: [p_re | p_im] @ [[w_re, w_im], [-w_im, w_re]] = [real|imag].
    w_blk = jnp.concatenate(
        [jnp.concatenate([wre, wim], axis=1),
         jnp.concatenate([-wim, wre], axis=1)], axis=0)            # (2K, 2Cop)

    b_real = b_re - b_im
    b_imag = b_re + b_im
    if pad_c:
        b_real = jnp.pad(b_real, (0, pad_c))
        b_imag = jnp.pad(b_imag, (0, pad_c))
    b_row = jnp.concatenate([b_real, b_imag]).reshape(1, 2 * Cop)
    b_row = b_row.astype(jnp.float32)

    if compute_dtype is not None:                                  # e.g. bf16 MXU
        p = p.astype(compute_dtype)
        w_blk = w_blk.astype(compute_dtype)

    out = _complex_mm(p, w_blk, b_row, out_dtype, tm=tm)           # (M, 2Cop)

    # Single reshape + one boundary transpose back to NCHW + trailing complex.
    out = out.reshape(N, OH, OW, 2, Cop)[..., :Co]                 # (N,OH,OW,2,Co)
    return out.transpose(0, 4, 1, 2, 3)                            # (N,Co,OH,OW,2)


# ------------------------------ reference ---------------------------------- #

def _conv_ref(x2d, w, b, stride, padding, dilation):
    out = jax.lax.conv_general_dilated(
        x2d, w,
        window_strides=(stride, stride),
        padding=((padding, padding), (padding, padding)),
        rhs_dilation=(dilation, dilation),
        dimension_numbers=("NCHW", "OIHW", "NCHW"))
    return out + b[None, :, None, None]


def _complex_conv_ref(x, w_re, w_im, b_re, b_im, stride, padding, dilation):
    x_re, x_im = x[..., 0], x[..., 1]
    real = (_conv_ref(x_re, w_re, b_re, stride, padding, dilation)
            - _conv_ref(x_im, w_im, b_im, stride, padding, dilation))
    imag = (_conv_ref(x_im, w_re, b_re, stride, padding, dilation)
            + _conv_ref(x_re, w_im, b_im, stride, padding, dilation))
    return jnp.stack((real, imag), axis=-1)


# -------------------------------- main ------------------------------------- #

if __name__ == "__main__":
    key = jax.random.PRNGKey(0)

    N, Cin, H, W = 2, 4, 16, 16
    Cout, KH, KW = 8, 3, 3
    stride, padding, dilation = 1, 1, 1

    k_x, k_wre, k_wim, k_bre, k_bim = jax.random.split(key, 5)

    x = jax.random.normal(k_x, (N, Cin, H, W, 2), dtype=jnp.float32)

    # Deterministic init mimicking nn.Conv2d default (uniform +/- 1/sqrt(fan_in)).
    fan_in = Cin * KH * KW
    bound = 1.0 / math.sqrt(fan_in)
    w_re = jax.random.uniform(k_wre, (Cout, Cin, KH, KW), jnp.float32, -bound, bound)
    w_im = jax.random.uniform(k_wim, (Cout, Cin, KH, KW), jnp.float32, -bound, bound)
    b_re = jax.random.uniform(k_bre, (Cout,), jnp.float32, -bound, bound)
    b_im = jax.random.uniform(k_bim, (Cout,), jnp.float32, -bound, bound)

    ref = _complex_conv_ref(x, w_re, w_im, b_re, b_im, stride, padding, dilation)

    # f32 path (exact semantics of the torch module).
    out = complex_conv2d(x, w_re, w_im, b_re, b_im,
                         stride=stride, padding=padding, dilation=dilation)
    out = jax.block_until_ready(out)
    assert out.shape == (N, Cout, H, W, 2), out.shape
    assert jnp.allclose(out, ref, atol=1e-4, rtol=1e-4), "f32 mismatch vs reference"

    # bf16 compute path (v6e/v7x MXU-native); f32 accumulation, looser tolerance.
    out_bf16 = complex_conv2d(x, w_re, w_im, b_re, b_im,
                              stride=stride, padding=padding, dilation=dilation,
                              compute_dtype=jnp.bfloat16)
    out_bf16 = jax.block_until_ready(out_bf16)
    assert out_bf16.shape == (N, Cout, H, W, 2), out_bf16.shape
    assert jnp.allclose(out_bf16, ref, atol=5e-2, rtol=5e-2), "bf16 mismatch vs reference"

    print("KERNEL_OK")
</pallas_src>

<mosaic_0001>
module attributes {stable_mosaic.version = 11 : i64} {
  func.func @_complex_conv_mm_kernel(%arg0: i32, %arg1: memref<256x72xf32, #tpu.memory_space<vmem>>, %arg2: memref<72x128xf32, #tpu.memory_space<vmem>>, %arg3: memref<1x128xf32, #tpu.memory_space<vmem>>, %arg4: memref<256x128xf32, #tpu.memory_space<vmem>>) attributes {dimension_semantics = [#tpu.dimension_semantics<parallel>], iteration_bounds = array<i64: 2>, scalar_prefetch = 0 : i64, scratch_operands = 0 : i64, tpu.core_type = #tpu.core_type<tc>, window_params = [{transform_indices = @transform_0, window_bounds = array<i64: 256, 72>}, {pipeline_mode = #tpu.pipeline_mode<synchronous>, transform_indices = @transform_1, window_bounds = array<i64: 72, 128>}, {pipeline_mode = #tpu.pipeline_mode<synchronous>, transform_indices = @transform_2, window_bounds = array<i64: 1, 128>}, {transform_indices = @transform_3, window_bounds = array<i64: 256, 128>}]} {
    %c0 = arith.constant 0 : index
    %c0_0 = arith.constant 0 : index
    %0 = vector.load %arg1[%c0, %c0_0] : memref<256x72xf32, #tpu.memory_space<vmem>>, vector<256x72xf32>
    %c0_1 = arith.constant 0 : index
    %c0_2 = arith.constant 0 : index
    %1 = vector.load %arg2[%c0_1, %c0_2] : memref<72x128xf32, #tpu.memory_space<vmem>>, vector<72x128xf32>
    %cst = arith.constant dense<0.000000e+00> : vector<256x128xf32>
    %2 = tpu.matmul %0, %1, %cst {dimension_numbers = #tpu.dot_dimension_numbers<[1], [0], [0], [1], [0, 0, 1, 1], [], []>} : vector<256x72xf32>, vector<72x128xf32>, vector<256x128xf32> -> vector<256x128xf32>
    %c0_3 = arith.constant 0 : index
    %c0_4 = arith.constant 0 : index
    %3 = vector.load %arg3[%c0_3, %c0_4] : memref<1x128xf32, #tpu.memory_space<vmem>>, vector<1x128xf32>
    %4 = vector.broadcast %3 : vector<1x128xf32> to vector<256x128xf32>
    %5 = arith.addf %2, %4 : vector<256x128xf32>
    %c0_5 = arith.constant 0 : index
    %c0_6 = arith.constant 0 : index
    %6 = vector.load %arg4[%c0_5, %c0_6] : memref<256x128xf32, #tpu.memory_space<vmem>>, vector<256x128xf32>
    tpu.vector_store %arg4[%c0_5, %c0_6], %5 {strides = array<i32>} : memref<256x128xf32, #tpu.memory_space<vmem>>, vector<256x128xf32>,
    return
  }
  func.func @transform_0(%arg0: i32) -> (i32, i32) {
    %c0_i32 = arith.constant 0 : i32
    %c0_i32_0 = arith.constant 0 : i32
    return %arg0, %c0_i32 : i32, i32
  }
  func.func @transform_1(%arg0: i32) -> (i32, i32) {
    %c0_i32 = arith.constant 0 : i32
    %c0_i32_0 = arith.constant 0 : i32
    %c0_i32_1 = arith.constant 0 : i32
    return %c0_i32, %c0_i32_0 : i32, i32
  }
  func.func @transform_2(%arg0: i32) -> (i32, i32) {
    %c0_i32 = arith.constant 0 : i32
    %c0_i32_0 = arith.constant 0 : i32
    %c0_i32_1 = arith.constant 0 : i32
    return %c0_i32, %c0_i32_0 : i32, i32
  }
  func.func @transform_3(%arg0: i32) -> (i32, i32) {
    %c0_i32 = arith.constant 0 : i32
    %c0_i32_0 = arith.constant 0 : i32
    return %arg0, %c0_i32 : i32, i32
  }
}

</mosaic_0001>

<bundles_post_ra>
// kernel: complex_conv2d.1
= control target key start
LH: loop header
LB: loop body
LE: loop exit
PB: predicated region body
PF: predicated region fallthrough
CT: control target
= control target key end

     0   :  { %s845_s12 = smov 0   ;;  %s1033_s0 = inlined_call_operand.vmem [shape: f32[512,72], index: 0, kind: input, shape index: {}]   ;;  %s1034_s1 = inlined_call_operand.vmem [shape: f32[72,128], index: 1, kind: input, shape index: {}]   ;;  %s1035_s2 = inlined_call_operand.vmem [shape: f32[1,128], index: 2, kind: input, shape index: {}]   ;;  %s1036_s3 = inlined_call_operand.vmem [shape: f32[512,128], index: 3, kind: output, shape index: {}]  }
   0x1 LB: > { %s632_s13 = sadd.s32 4294967295, %s823_s12   ;;  %p636_p0 = scmp.ge.s32.totalorder %s823_s12, 1  ;;  %s823_s12 = sphi %s845_s12, %s13_s12  }
   0x2   : > { %p138_p1 = scmp.lt.s32.totalorder %s823_s12, 3 }
   0x4   : > { %p139_p2 = pnand %p636_p0, %p138_p1 }
   0x5   : > { %v206_v0 = vld [vmem:[%s1034_s1] sm:$0xff] (!%p139_p2)  ;;  %v207_v1 = vld [vmem:[%s1034_s1 + $0x8] sm:$0xff] (!%p139_p2)  ;;  %v208_v2 = vld [vmem:[%s1034_s1 + $0x10] sm:$0xff] (!%p139_p2)  ;;  %s637_s20 = sshll.u32 (!%p139_p2), %s632_s13, 5  ;;  %vm222_vm0 = vcmask (!%p139_p2), 588800  }
   0x6   : > { %142 = sbr.rel (%p139_p2) target bundleno = 271 (0x10f), region = 32  ;;  %v783_v3 = vpack.c.bf16 (!%p139_p2), %v207_v1, %v206_v0  ;;  %v209_v4 = vld [vmem:[%s1034_s1 + $0x18] sm:$0xff] (!%p139_p2)  ;;  %p163_p3 = scmp.lt.s32.totalorder (!%p139_p2), %s637_s20, 63  ;;  %v210_v6 = vld [vmem:[%s1034_s1 + $0x20] sm:$0xff] (!%p139_p2)  ;;  %v211_v7 = vld [vmem:[%s1034_s1 + $0x28] sm:$0xff] (!%p139_p2) }
   0x7   : > { %v787_v5 = vpack.c.bf16 (!%p139_p2), %v209_v4, %v208_v2  ;;  %v791_v8 = vpack.c.bf16 (!%p139_p2), %v211_v7, %v210_v6  ;;  %v212_v9 = vld [vmem:[%s1034_s1 + $0x30] sm:$0xff] (!%p139_p2)  ;;  %v213_v10 = vld [vmem:[%s1034_s1 + $0x38] sm:$0xff] (!%p139_p2)  ;;  %v214_v14 = vld [vmem:[%s1034_s1 + $0x40] sm:$0xff] (!%p139_p2) }
   0x8   : > { %784 = vmatprep.subr.bf16.mxu0 (!%p139_p2), %v783_v3  ;;  %799 = vmatprep.subr.bf16.mxu1 (!%p139_p2), %v783_v3  ;;  %v795_v13 = vpack.c.bf16 (!%p139_p2), %v213_v10, %v212_v9  ;;  %v957_v45 = vld [vmem:[%s1035_s2] ss:$0 sm:$0xff] (!%p139_p2) }
   0x9   : > { %786 = vmatpush3.bf16.msra.mxu0 (!%p139_p2), %v783_v3  ;;  %804 = vmatpush3.bf16.msra.mxu1 (!%p139_p2), %v783_v3 }
   0xa   : > { %788 = vmatprep.subr.bf16.mxu0 (!%p139_p2), %v787_v5  ;;  %800 = vmatprep.subr.bf16.mxu1 (!%p139_p2), %v787_v5 }
   0xd   : > { %s1038_s20 = smov (!%p163_p3, %s637_s20), 63  ;;  %790 = vmatpush3.bf16.msra.mxu0 %v787_v5  ;;  %805 = vmatpush3.bf16.msra.mxu1 %v787_v5 }
   0xe   : > { %s638_s27 = sshll.u32 %s1038_s20, 3  ;;  %792 = vmatprep.subr.bf16.mxu0 %v791_v8  ;;  %801 = vmatprep.subr.bf16.mxu1 %v791_v8 }
   0xf   : > { %s885_s7 = scalar_lea.vmem %s1033_s0, %s638_s27  ;;  %s964_s15 = scalar_lea.vmem %s1036_s3, %s638_s27 }
  0x10   : > { %v174_v11 = vld [vmem:[%s885_s7] sm:$0xff]  ;;  %v175_v15 = vld [vmem:[%s885_s7 + $0x8] sm:$0xff]  ;;  %v176_v17 = vld [vmem:[%s885_s7 + $0x10] sm:$0xff] }
  0x11   : > { %v190_v12 = vld [vmem:[%s885_s7 + $0x80] sm:$0xff]  ;;  %735 = vmatprep.mubr.msk.f32.mxu0 %vm222_vm0, %v174_v11  ;;  %794 = vmatpush3.bf16.msra.mxu0 %v791_v8  ;;  %v191_v16 = vld [vmem:[%s885_s7 + $0x88] sm:$0xff]  ;;  %v192_v18 = vld [vmem:[%s885_s7 + $0x90] sm:$0xff] }
  0x12   : > { %759 = vmatprep.mubr.msk.f32.mxu1 %vm222_vm0, %v190_v12  ;;  %806 = vmatpush3.bf16.msra.mxu1 %v791_v8  ;;  %v177_v19 = vld [vmem:[%s885_s7 + $0x18] sm:$0xff]  ;;  %v178_v21 = vld [vmem:[%s885_s7 + $0x20] sm:$0xff]  ;;  %v179_v23 = vld [vmem:[%s885_s7 + $0x28] sm:$0xff] }
  0x13   : > { %796 = vmatprep.subr.bf16.mxu0 %v795_v13  ;;  %802 = vmatprep.subr.bf16.mxu1 %v795_v13  ;;  %v193_v20 = vld [vmem:[%s885_s7 + $0x98] sm:$0xff]  ;;  %v194_v22 = vld [vmem:[%s885_s7 + $0xa0] sm:$0xff]  ;;  %v195_v24 = vld [vmem:[%s885_s7 + $0xa8] sm:$0xff] }
  0x14   : > { %v180_v25 = vld [vmem:[%s885_s7 + $0x30] sm:$0xff]  ;;  %v181_v27 = vld [vmem:[%s885_s7 + $0x38] sm:$0xff]  ;;  %v182_v29 = vld [vmem:[%s885_s7 + $0x40] sm:$0xff] }
  0x15   : > { %798 = vmatpush3.bf16.msra.mxu0 %v795_v13  ;;  %v196_v26 = vld [vmem:[%s885_s7 + $0xb0] sm:$0xff]  ;;  %v197_v28 = vld [vmem:[%s885_s7 + $0xb8] sm:$0xff]  ;;  %v198_v30 = vld [vmem:[%s885_s7 + $0xc0] sm:$0xff] }
  0x16   : > { %807 = vmatpush3.bf16.msra.mxu1 %v795_v13  ;;  %733 = vmatprep.subr.mxu0 %v214_v14  ;;  %v183_v31 = vld [vmem:[%s885_s7 + $0x48] sm:$0xff]  ;;  %v184_v33 = vld [vmem:[%s885_s7 + $0x50] sm:$0xff]  ;;  %v185_v35 = vld [vmem:[%s885_s7 + $0x58] sm:$0xff] }
  0x17   : > { %803 = vmatprep.subr.mxu1 %v214_v14  ;;  %v199_v32 = vld [vmem:[%s885_s7 + $0xc8] sm:$0xff]  ;;  %v200_v34 = vld [vmem:[%s885_s7 + $0xd0] sm:$0xff]  ;;  %v201_v36 = vld [vmem:[%s885_s7 + $0xd8] sm:$0xff] }
  0x18   : > { %v186_v37 = vld [vmem:[%s885_s7 + $0x60] sm:$0xff]  ;;  %v187_v39 = vld [vmem:[%s885_s7 + $0x68] sm:$0xff]  ;;  %v188_v41 = vld [vmem:[%s885_s7 + $0x70] sm:$0xff] }
  0x19   : > { %734 = vmatpush3.msra.mxu0 %v214_v14  ;;  %v202_v38 = vld [vmem:[%s885_s7 + $0xe0] sm:$0xff]  ;;  %v203_v40 = vld [vmem:[%s885_s7 + $0xe8] sm:$0xff]  ;;  %v204_v42 = vld [vmem:[%s885_s7 + $0xf0] sm:$0xff] }
  0x1a   : > { %808 = vmatpush3.msra.mxu1 %v214_v14  ;;  %736 = vmatmul.mubr.msk.f32.vlgmr.msra.gmra.mrb[0].mxu0 %vm222_vm0, %v175_v15  ;;  %v189_v43 = vld [vmem:[%s885_s7 + $0x78] sm:$0xff] }
  0x1b   : > { %760 = vmatmul.mubr.msk.f32.vlgmr.msra.gmra.mrb[0].mxu1 %vm222_vm0, %v191_v16  ;;  %738 = vmatprep.mubr.msk.f32.mxu0 %vm222_vm0, %v176_v17  ;;  %v205_v44 = vld [vmem:[%s885_s7 + $0xf8] sm:$0xff] }
  0x1c   : > { %762 = vmatprep.mubr.msk.f32.mxu1 %vm222_vm0, %v192_v18 }
  0x1e   : > { %739 = vmatmul.mubr.msk.f32.gmra.mrb[2].mxu0 %vm222_vm0, %v177_v19 }
  0x1f   : > { %763 = vmatmul.mubr.msk.f32.gmra.mrb[2].mxu1 %vm222_vm0, %v193_v20  ;;  %741 = vmatprep.mubr.msk.f32.mxu0 %vm222_vm0, %v178_v21 }
  0x20   : > { %765 = vmatprep.mubr.msk.f32.mxu1 %vm222_vm0, %v194_v22 }
  0x22   : > { %742 = vmatmul.mubr.msk.f32.gmra.mrb[4].mxu0 %vm222_vm0, %v179_v23 }
  0x23   : > { %766 = vmatmul.mubr.msk.f32.gmra.mrb[4].mxu1 %vm222_vm0, %v195_v24  ;;  %744 = vmatprep.mubr.msk.f32.mxu0 %vm222_vm0, %v180_v25 }
  0x24   : > { %768 = vmatprep.mubr.msk.f32.mxu1 %vm222_vm0, %v196_v26 }
  0x26   : > { %745 = vmatmul.mubr.msk.f32.gmra.mrb[6].mxu0 %vm222_vm0, %v181_v27 }
  0x27   : > { %769 = vmatmul.mubr.msk.f32.gmra.mrb[6].mxu1 %vm222_vm0, %v197_v28  ;;  %747 = vmatprep.mubr.msk.f32.mxu0 %vm222_vm0, %v182_v29 }
  0x28   : > { %771 = vmatprep.mubr.msk.f32.mxu1 %vm222_vm0, %v198_v30 }
  0x2a   : > { %748 = vmatmul.mubr.msk.f32.gmra.mrb[8].mxu0 %vm222_vm0, %v183_v31 }
  0x2b   : > { %772 = vmatmul.mubr.msk.f32.gmra.mrb[8].mxu1 %vm222_vm0, %v199_v32  ;;  %750 = vmatprep.mubr.msk.f32.mxu0 %vm222_vm0, %v184_v33 }
  0x2c   : > { %774 = vmatprep.mubr.msk.f32.mxu1 %vm222_vm0, %v200_v34 }
  0x2e   : > { %751 = vmatmul.mubr.msk.f32.gmra.mrb[10].mxu0 %vm222_vm0, %v185_v35 }
  0x2f   : > { %775 = vmatmul.mubr.msk.f32.gmra.mrb[10].mxu1 %vm222_vm0, %v201_v36  ;;  %753 = vmatprep.mubr.msk.f32.mxu0 %vm222_vm0, %v186_v37 }
  0x30   : > { %777 = vmatprep.mubr.msk.f32.mxu1 %vm222_vm0, %v202_v38 }
  0x32   : > { %754 = vmatmul.mubr.msk.f32.gmra.mrb[12].mxu0 %vm222_vm0, %v187_v39 }
  0x33   : > { %778 = vmatmul.mubr.msk.f32.gmra.mrb[12].mxu1 %vm222_vm0, %v203_v40  ;;  %756 = vmatprep.mubr.msk.f32.mxu0 %vm222_vm0, %v188_v41 }
  0x34   : > { %780 = vmatprep.mubr.msk.f32.mxu1 %vm222_vm0, %v204_v42 }
  0x36   : > { %757 = vmatmul.mubr.msk.f32.gmra.mrb[14].mxu0 %vm222_vm0, %v189_v43 }
  0x37   : > { %781 = vmatmul.mubr.msk.f32.gmra.mrb[14].mxu1 %vm222_vm0, %v205_v44 }
  0xed   : > { %v737_v46 = vpop.f32.mrb[0].mxu0 }
  0xee   : > { %v761_v47 = vpop.f32.mrb[0].mxu1  ;;  %v391_v48 = vadd.f32 %v737_v46, %v957_v45  ;;  %v385_v50 = vpop.f32.mrb[1].mxu0 }
  0xef   : > { %v471_v49 = vadd.f32 %v761_v47, %v957_v45  ;;  %v465_v51 = vpop.f32.mrb[1].mxu1  ;;  %v386_v52 = vadd.f32 %v957_v45, %v385_v50 }
  0xf0   : > { %v466_v53 = vadd.f32 %v957_v45, %v465_v51  ;;  %545 = vst [vmem:[%s964_s15 + $0x8] sm:$0xff] %v391_v48 }
  0xf1   : > { %561 = vst [vmem:[%s964_s15 + $0x88] sm:$0xff] %v471_v49  ;;  %544 = vst [vmem:[%s964_s15] sm:$0xff] %v386_v52  ;;  %v740_v54 = vpop.f32.mrb[2].mxu0 }
  0xf2   : > { %560 = vst [vmem:[%s964_s15 + $0x80] sm:$0xff] %v466_v53  ;;  %v764_v55 = vpop.f32.mrb[2].mxu1  ;;  %v401_v56 = vadd.f32 %v740_v54, %v957_v45  ;;  %v395_v58 = vpop.f32.mrb[3].mxu0 }
  0xf3   : > { %v481_v57 = vadd.f32 %v764_v55, %v957_v45  ;;  %v475_v59 = vpop.f32.mrb[3].mxu1  ;;  %v396_v60 = vadd.f32 %v957_v45, %v395_v58 }
  0xf4   : > { %v476_v61 = vadd.f32 %v957_v45, %v475_v59  ;;  %547 = vst [vmem:[%s964_s15 + $0x18] sm:$0xff] %v401_v56 }
  0xf5   : > { %563 = vst [vmem:[%s964_s15 + $0x98] sm:$0xff] %v481_v57  ;;  %546 = vst [vmem:[%s964_s15 + $0x10] sm:$0xff] %v396_v60  ;;  %v743_v62 = vpop.f32.mrb[4].mxu0 }
  0xf6   : > { %562 = vst [vmem:[%s964_s15 + $0x90] sm:$0xff] %v476_v61  ;;  %v767_v63 = vpop.f32.mrb[4].mxu1  ;;  %v411_v0 = vadd.f32 %v743_v62, %v957_v45  ;;  %v405_v2 = vpop.f32.mrb[5].mxu0 }
  0xf7   : > { %v491_v1 = vadd.f32 %v767_v63, %v957_v45  ;;  %v485_v3 = vpop.f32.mrb[5].mxu1  ;;  %v406_v4 = vadd.f32 %v957_v45, %v405_v2 }
  0xf8   : > { %v486_v5 = vadd.f32 %v957_v45, %v485_v3  ;;  %549 = vst [vmem:[%s964_s15 + $0x28] sm:$0xff] %v411_v0 }
  0xf9   : > { %565 = vst [vmem:[%s964_s15 + $0xa8] sm:$0xff] %v491_v1  ;;  %548 = vst [vmem:[%s964_s15 + $0x20] sm:$0xff] %v406_v4  ;;  %v746_v6 = vpop.f32.mrb[6].mxu0 }
  0xfa   : > { %564 = vst [vmem:[%s964_s15 + $0xa0] sm:$0xff] %v486_v5  ;;  %v770_v7 = vpop.f32.mrb[6].mxu1  ;;  %v421_v8 = vadd.f32 %v746_v6, %v957_v45  ;;  %v415_v10 = vpop.f32.mrb[7].mxu0 }
  0xfb   : > { %v501_v9 = vadd.f32 %v770_v7, %v957_v45  ;;  %v495_v11 = vpop.f32.mrb[7].mxu1  ;;  %v416_v12 = vadd.f32 %v957_v45, %v415_v10 }
  0xfc   : > { %v496_v13 = vadd.f32 %v957_v45, %v495_v11  ;;  %551 = vst [vmem:[%s964_s15 + $0x38] sm:$0xff] %v421_v8 }
  0xfd   : > { %567 = vst [vmem:[%s964_s15 + $0xb8] sm:$0xff] %v501_v9  ;;  %550 = vst [vmem:[%s964_s15 + $0x30] sm:$0xff] %v416_v12  ;;  %v749_v14 = vpop.f32.mrb[8].mxu0 }
  0xfe   : > { %566 = vst [vmem:[%s964_s15 + $0xb0] sm:$0xff] %v496_v13  ;;  %v773_v15 = vpop.f32.mrb[8].mxu1  ;;  %v431_v16 = vadd.f32 %v749_v14, %v957_v45  ;;  %v425_v18 = vpop.f32.mrb[9].mxu0 }
  0xff   : > { %v511_v17 = vadd.f32 %v773_v15, %v957_v45  ;;  %v505_v19 = vpop.f32.mrb[9].mxu1  ;;  %v426_v20 = vadd.f32 %v957_v45, %v425_v18 }
 0x100   : > { %v506_v21 = vadd.f32 %v957_v45, %v505_v19  ;;  %553 = vst [vmem:[%s964_s15 + $0x48] sm:$0xff] %v431_v16 }
 0x101   : > { %569 = vst [vmem:[%s964_s15 + $0xc8] sm:$0xff] %v511_v17  ;;  %552 = vst [vmem:[%s964_s15 + $0x40] sm:$0xff] %v426_v20  ;;  %v752_v22 = vpop.f32.mrb[10].mxu0 }
 0x102   : > { %568 = vst [vmem:[%s964_s15 + $0xc0] sm:$0xff] %v506_v21  ;;  %v776_v23 = vpop.f32.mrb[10].mxu1  ;;  %v441_v24 = vadd.f32 %v752_v22, %v957_v45  ;;  %v435_v26 = vpop.f32.mrb[11].mxu0 }
 0x103   : > { %v521_v25 = vadd.f32 %v776_v23, %v957_v45  ;;  %v515_v27 = vpop.f32.mrb[11].mxu1  ;;  %v436_v28 = vadd.f32 %v957_v45, %v435_v26 }
 0x104   : > { %v516_v29 = vadd.f32 %v957_v45, %v515_v27  ;;  %555 = vst [vmem:[%s964_s15 + $0x58] sm:$0xff] %v441_v24 }
 0x105   : > { %571 = vst [vmem:[%s964_s15 + $0xd8] sm:$0xff] %v521_v25  ;;  %554 = vst [vmem:[%s964_s15 + $0x50] sm:$0xff] %v436_v28  ;;  %v755_v30 = vpop.f32.mrb[12].mxu0 }
 0x106   : > { %570 = vst [vmem:[%s964_s15 + $0xd0] sm:$0xff] %v516_v29  ;;  %v779_v31 = vpop.f32.mrb[12].mxu1  ;;  %v451_v32 = vadd.f32 %v755_v30, %v957_v45  ;;  %v445_v34 = vpop.f32.mrb[13].mxu0 }
 0x107   : > { %v531_v33 = vadd.f32 %v779_v31, %v957_v45  ;;  %v525_v35 = vpop.f32.mrb[13].mxu1  ;;  %v446_v36 = vadd.f32 %v957_v45, %v445_v34 }
 0x108   : > { %v526_v37 = vadd.f32 %v957_v45, %v525_v35  ;;  %557 = vst [vmem:[%s964_s15 + $0x68] sm:$0xff] %v451_v32 }
 0x109   : > { %573 = vst [vmem:[%s964_s15 + $0xe8] sm:$0xff] %v531_v33  ;;  %556 = vst [vmem:[%s964_s15 + $0x60] sm:$0xff] %v446_v36  ;;  %v758_v38 = vpop.f32.mrb[14].mxu0 }
 0x10a   : > { %572 = vst [vmem:[%s964_s15 + $0xe0] sm:$0xff] %v526_v37  ;;  %v782_v39 = vpop.f32.mrb[14].mxu1  ;;  %v461_v40 = vadd.f32 %v758_v38, %v957_v45  ;;  %v455_v42 = vpop.f32.mrb[15].mxu0 }
 0x10b   : > { %v541_v41 = vadd.f32 %v782_v39, %v957_v45  ;;  %v535_v43 = vpop.f32.mrb[15].mxu1  ;;  %v456_v44 = vadd.f32 %v957_v45, %v455_v42 }
 0x10c   : > { %v536_v46 = vadd.f32 %v957_v45, %v535_v43  ;;  %559 = vst [vmem:[%s964_s15 + $0x78] sm:$0xff] %v461_v40 }
 0x10d   : > { %575 = vst [vmem:[%s964_s15 + $0xf8] sm:$0xff] %v541_v41  ;;  %558 = vst [vmem:[%s964_s15 + $0x70] sm:$0xff] %v456_v44 }
 0x10e   : > { %574 = vst [vmem:[%s964_s15 + $0xf0] sm:$0xff] %v536_v46 }
 0x10f PF: > { %s13_s12 = sadd.s32 1, %s823_s12  }
 0x110   : > { %p10_p4 = scmp.ge.s32.totalorder %s13_s12, 4  }
 0x112   :  { %12 = sbr.rel (!%p10_p4) target bundleno = 1 (0x1), region = 62 }

</bundles_post_ra>
